<compile_context>
chip_gen: v7x
topology: tpu7x:2x2x1
jax: 0.10.0
libtpu: 0.0.40
codegen_flags: <defaults>
</compile_context>

<pallas_src>
import jax
import jax.numpy as jnp
from jax import lax
from jax.experimental import pallas as pl
from jax.experimental.pallas import tpu as pltpu


def _round_up(n, m):
    return ((n + m - 1) // m) * m


def _make_kernel(T, C, nx, ny, use_bf16):
    """Per-chunk kernel body.  T (timedelay) and C (chunk length, a multiple
    of T+1) are static Python ints."""
    P = T + 1
    n_inner = C // P
    compute_dtype = jnp.bfloat16 if use_bf16 else jnp.float32
    # Partial unroll: keep roughly 8 timesteps visible to the scheduler
    # (the static ring sub-steps already unroll by a factor of P).
    unroll = max(1, min(n_inner, max(1, 8 // P)))

    def kernel(xtd0_ref, fud_ref, w_ref, out_ref, xd_s):
        c = pl.program_id(0)

        # Initialize the lane-major ring buffer of delayed states on the
        # first chunk; it is carried across chunks in VMEM scratch.
        @pl.when(c == 0)
        def _():
            xd_s[...] = xtd0_ref[...]

        def body(j, carry):
            t0 = j * P
            # Static unroll over the ring period: the ring phase r (hence the
            # weight rotation and the state-store lane offset) is STATIC
            # because C is a multiple of T+1.
            for r in range(P):
                t = t0 + r
                xd = xd_s[...].astype(compute_dtype)        # (B, (T+1)*nx)
                # One fused MXU matmul -> [fx+fe(+x_prev) | fy | fe];
                # fu+fd and all biases are pre-folded into fud_ref.
                z = jnp.dot(xd, w_ref[r],
                            preferred_element_type=jnp.float32) + fud_ref[t]
                # Single lane-contiguous output store per step: [X | Y | fE].
                out_ref[t] = z
                # Ring-buffer update: overwrite only the oldest slot (static
                # lane offset) with the new state.  No full-buffer shift.
                xd_s[:, r * nx:(r + 1) * nx] = z[:, :nx]
            return carry

        lax.fori_loop(0, n_inner, body, 0, unroll=unroll)

    return kernel


def timedelay_block_ssm(data, params, timedelay, residual=False,
                        name="block_ssm", chunk=128, use_bf16_mxu=True):
    T = timedelay
    P = T + 1
    Xtd = data["Xtd"]                                   # (T+1, B, nx)
    Yf = data["Yf"]                                     # (nsteps, B, ny)
    nsteps = Yf.shape[0]
    B = Xtd.shape[1]
    nx = params["Wx"].shape[1]
    ny = params["Wy"].shape[1]
    K = P * nx
    Wout = 2 * nx + ny

    f32 = jnp.float32
    wdt = jnp.bfloat16 if use_bf16_mxu else f32

    # ---- Hoisted, recurrence-independent fU / fD (one batched matmul each).
    Utd = jnp.concatenate([data["Up"][-T:], data["Uf"]], axis=0)
    Dtd = jnp.concatenate([data["Dp"][-T:], data["Df"]], axis=0)
    u_win = jnp.concatenate([Utd[k:k + nsteps] for k in range(P)], axis=-1)
    d_win = jnp.concatenate([Dtd[k:k + nsteps] for k in range(P)], axis=-1)
    fU = (jnp.einsum("sbk,kn->sbn", u_win, params["Wu"])
          + params["bu"]).astype(f32)
    fD = (jnp.einsum("sbk,kn->sbn", d_win, params["Wd"])
          + params["bd"]).astype(f32)

    # ---- Full-width per-step additive term with all biases folded in:
    #      cols [0:nx]      -> fU + fD + bx + be
    #      cols [nx:nx+ny]  -> by
    #      cols [nx+ny:]    -> be
    fud_x = (fU + fD + params["bx"] + params["be"]).astype(f32)
    fud_y = jnp.broadcast_to(params["by"].astype(f32), (nsteps, B, ny))
    fud_e = jnp.broadcast_to(params["be"].astype(f32), (nsteps, B, nx))
    fud_full = jnp.concatenate([fud_x, fud_y, fud_e], axis=-1)  # (nsteps,B,Wout)

    # ---- Fused weight [Wx+We(+I) | Wy | We] plus its T+1 ring rotations.
    Wcol_x = params["Wx"] + params["We"]
    if residual:
        # x_prev is the newest delayed state -> identity in the last nx rows.
        Wcol_x = Wcol_x.at[T * nx:].add(jnp.eye(nx, dtype=Wcol_x.dtype))
    W = jnp.concatenate([Wcol_x, params["Wy"], params["We"]], axis=1)  # (K,Wout)
    W_blocks = W.reshape(P, nx, Wout)
    W_rot = jnp.stack(
        [jnp.roll(W_blocks, shift=r, axis=0).reshape(K, Wout)
         for r in range(P)]).astype(wdt)                            # (P,K,Wout)

    # ---- Initial ring buffer, lane-major oldest-first (ring phase 0).
    xtd0 = jnp.transpose(Xtd, (1, 0, 2)).reshape(B, K).astype(f32)

    # ---- Chunking: C must be a multiple of T+1 (static ring phase); pad the
    # horizon up to a multiple of C (tail steps run on zeroed inputs and are
    # sliced off), so no divisor-of-nsteps requirement and no C=1 collapse.
    C = max(P, (max(1, min(chunk, nsteps)) // P) * P)
    nsteps_pad = _round_up(nsteps, C)
    if nsteps_pad != nsteps:
        fud_full = jnp.pad(fud_full,
                           ((0, nsteps_pad - nsteps), (0, 0), (0, 0)))
    num_chunks = nsteps_pad // C

    # ---- VMEM budget: real footprint + headroom (never pin the full 64 MiB,
    # which is v7x's entire per-core VMEM).
    wt_bytes = 2 if use_bf16_mxu else 4
    io_tile = C * _round_up(B, 8) * _round_up(Wout, 128) * 4
    need = (2 * io_tile                                          # fud (2-buf)
            + 2 * io_tile                                        # out (2-buf)
            + 2 * P * _round_up(K, 16) * _round_up(Wout, 128) * wt_bytes
            + 3 * _round_up(B, 8) * _round_up(K, 128) * 4)       # xtd0 + scratch
    vmem_limit = int(max(need + (4 << 20), 16 << 20))

    kernel = _make_kernel(T, C, nx, ny, use_bf16_mxu)

    # TODO(synk): xtd0/W_rot are grid-invariant; pipeline_mode=pl.Buffered(1)
    # would single-buffer them and save their (tiny here) VMEM duplication.
    out = pl.pallas_call(
        kernel,
        out_shape=jax.ShapeDtypeStruct((nsteps_pad, B, Wout), f32),
        grid_spec=pltpu.PrefetchScalarGridSpec(
            num_scalar_prefetch=0,
            grid=(num_chunks,),
            in_specs=[
                pl.BlockSpec((B, K), lambda c: (0, 0)),           # xtd0
                pl.BlockSpec((C, B, Wout), lambda c: (c, 0, 0)),  # fud chunk
                pl.BlockSpec((P, K, Wout), lambda c: (0, 0, 0)),  # W rotations
            ],
            out_specs=pl.BlockSpec((C, B, Wout), lambda c: (c, 0, 0)),
            scratch_shapes=[pltpu.VMEM((B, K), f32)],
        ),
        compiler_params=pltpu.CompilerParams(
            dimension_semantics=("arbitrary",),      # sequential recurrence
            vmem_limit_bytes=vmem_limit,
        ),
    )(xtd0, fud_full, W_rot)

    out = out[:nsteps]
    X = out[..., :nx]
    Y = out[..., nx:nx + ny]
    FE = out[..., nx + ny:]

    # TODO(synk): for B >= 2 shards on v7x, add a leading "parallel" batch
    # grid axis (per-shard xd_s scratch, chunk-axis-keyed init) to use the
    # second TensorCore.
    # TODO(synk): for tiny nx/ny/B, block the linear recurrence algebraically
    # (S-step transition matrices) to lift MXU utilization above ~1%.
    # TODO(synk): if B >= 128 and Wout << 128, transpose to batch-as-lane
    # layout for unmasked lane-dense stores.
    # TODO(synk): reg_error() sums children's reg_error(); plain linear
    # blocks have none, so it is identically 0 (scalar kept on host).
    return {
        f"X_pred_{name}": X,
        f"Y_pred_{name}": Y,
        f"fU_{name}": fU,
        f"fD_{name}": fD,
        f"fE_{name}": FE,
        f"reg_error_{name}": jnp.float32(0.0),
    }


def reference_forward(data, params, T, residual=False):
    """Pure-JAX replica of the PyTorch forward loop (for verification)."""
    Xtd = data["Xtd"]
    Utd = jnp.concatenate([data["Up"][-T:], data["Uf"]], axis=0)
    Dtd = jnp.concatenate([data["Dp"][-T:], data["Df"]], axis=0)
    nsteps = data["Yf"].shape[0]
    X, Y, FU, FD, FE = [], [], [], [], []
    for i in range(nsteps):
        x_prev = Xtd[-1]
        xd = jnp.concatenate([Xtd[k] for k in range(Xtd.shape[0])], axis=-1)
        x = xd @ params["Wx"] + params["bx"]
        ud = jnp.concatenate([Utd[i + k] for k in range(T + 1)], axis=-1)
        fu = ud @ params["Wu"] + params["bu"]
        x = x + fu
        dd = jnp.concatenate([Dtd[i + k] for k in range(T + 1)], axis=-1)
        fd = dd @ params["Wd"] + params["bd"]
        x = x + fd
        fe = xd @ params["We"] + params["be"]
        x = x + fe
        if residual:
            x = x + x_prev
        Xtd = jnp.concatenate([Xtd, x[None]], axis=0)[1:]
        y = xd @ params["Wy"] + params["by"]
        X.append(x); Y.append(y); FU.append(fu); FD.append(fd); FE.append(fe)
    return tuple(jnp.stack(t) for t in (X, Y, FU, FD, FE))


if __name__ == "__main__":
    # Small deterministic problem.
    T = 2          # timedelay
    nsteps = 8
    B = 4
    nx, nu, nd, ny = 8, 4, 3, 5

    key = jax.random.PRNGKey(0)
    ks = jax.random.split(key, 16)

    def w(k, shape):
        return (0.1 * jax.random.normal(k, shape)).astype(jnp.float32)

    params = {
        "Wx": w(ks[0], ((T + 1) * nx, nx)), "bx": w(ks[1], (1, nx)),
        "Wy": w(ks[2], ((T + 1) * nx, ny)), "by": w(ks[3], (1, ny)),
        "Wu": w(ks[4], ((T + 1) * nu, nx)), "bu": w(ks[5], (1, nx)),
        "Wd": w(ks[6], ((T + 1) * nd, nx)), "bd": w(ks[7], (1, nx)),
        "We": w(ks[8], ((T + 1) * nx, nx)), "be": w(ks[9], (1, nx)),
    }

    data = {
        "Xtd": w(ks[10], (T + 1, B, nx)),
        "Yf":  w(ks[11], (nsteps, B, ny)),
        "Uf":  w(ks[12], (nsteps, B, nu)),
        "Up":  w(ks[13], (T, B, nu)),
        "Df":  w(ks[14], (nsteps, B, nd)),
        "Dp":  w(ks[15], (T, B, nd)),
    }

    names = ["X_pred", "Y_pred", "fU", "fD", "fE"]

    # Config 1: f32 MXU, large chunk (C=6, padded horizon, 2 grid steps).
    # Config 2: f32 MXU, residual, chunk=5 -> C=3, horizon padded 8->9,
    #           3 grid steps (exercises cross-chunk ring-buffer carry).
    # Config 3: bf16 MXU operands (with residual identity folded into the
    #           bf16 weight) -> looser tolerance for recurrent rounding.
    configs = [
        (False, 64, False, 1e-4, 1e-4),
        (True,   5, False, 1e-4, 1e-4),
        (True,   6, True,  5e-2, 5e-2),
    ]
    for residual, chunk, use_bf16, atol, rtol in configs:
        out = timedelay_block_ssm(data, params, T, residual=residual,
                                  chunk=chunk, use_bf16_mxu=use_bf16)
        jax.block_until_ready(out)
        ref = reference_forward(data, params, T, residual=residual)
        for nm, r in zip(names, ref):
            got = out[f"{nm}_block_ssm"]
            assert got.shape == r.shape, (nm, got.shape, r.shape)
            err = float(jnp.max(jnp.abs(got - r)))
            assert jnp.allclose(got, r, rtol=rtol, atol=atol), (
                nm, residual, use_bf16, err)

    print("KERNEL_OK")
</pallas_src>

<mosaic_0001>
module attributes {stable_mosaic.version = 11 : i64} {
  func.func @kernel(%arg0: i32, %arg1: memref<4x24xf32, #tpu.memory_space<vmem>>, %arg2: memref<6x4x21xf32, #tpu.memory_space<vmem>>, %arg3: memref<3x24x21xf32, #tpu.memory_space<vmem>>, %arg4: memref<6x4x21xf32, #tpu.memory_space<vmem>>, %arg5: memref<4x24xf32, #tpu.memory_space<vmem>>) attributes {dimension_semantics = [#tpu.dimension_semantics<arbitrary>], iteration_bounds = array<i64: 2>, scalar_prefetch = 0 : i64, scratch_operands = 1 : i64, tpu.core_type = #tpu.core_type<tc>, window_params = [{pipeline_mode = #tpu.pipeline_mode<synchronous>, transform_indices = @transform_0, window_bounds = array<i64: 4, 24>}, {transform_indices = @transform_1, window_bounds = array<i64: 6, 4, 21>}, {pipeline_mode = #tpu.pipeline_mode<synchronous>, transform_indices = @transform_2, window_bounds = array<i64: 3, 24, 21>}, {transform_indices = @transform_3, window_bounds = array<i64: 6, 4, 21>}]} {
    %c0_i32 = arith.constant 0 : i32
    %0 = arith.cmpi eq, %arg0, %c0_i32 : i32
    %1 = arith.extui %0 : i1 to i32
    %c0_i32_0 = arith.constant 0 : i32
    %2 = arith.cmpi ne, %1, %c0_i32_0 : i32
    scf.if %2 {
      %c0_75 = arith.constant 0 : index
      %c0_76 = arith.constant 0 : index
      %95 = vector.load %arg1[%c0_75, %c0_76] : memref<4x24xf32, #tpu.memory_space<vmem>>, vector<4x24xf32>
      %c0_77 = arith.constant 0 : index
      %c0_78 = arith.constant 0 : index
      %96 = vector.load %arg5[%c0_77, %c0_78] : memref<4x24xf32, #tpu.memory_space<vmem>>, vector<4x24xf32>
      tpu.vector_store %arg5[%c0_77, %c0_78], %95 {strides = array<i32>} : memref<4x24xf32, #tpu.memory_space<vmem>>, vector<4x24xf32>,
    } else {
    }
    %c0_i32_1 = arith.constant 0 : i32
    %c3_i32 = arith.constant 3 : i32
    %3 = arith.muli %c0_i32_1, %c3_i32 : i32
    %c0_i32_2 = arith.constant 0 : i32
    %4 = arith.addi %3, %c0_i32_2 : i32
    %c0 = arith.constant 0 : index
    %c0_3 = arith.constant 0 : index
    %5 = vector.load %arg5[%c0, %c0_3] : memref<4x24xf32, #tpu.memory_space<vmem>>, vector<4x24xf32>
    %c0_4 = arith.constant 0 : index
    %c0_5 = arith.constant 0 : index
    %c0_6 = arith.constant 0 : index
    %6 = vector.load %arg3[%c0_4, %c0_5, %c0_6] : memref<3x24x21xf32, #tpu.memory_space<vmem>>, vector<1x24x21xf32>
    %7 = vector.shape_cast %6 : vector<1x24x21xf32> to vector<24x21xf32>
    %cst = arith.constant dense<0.000000e+00> : vector<4x21xf32>
    %8 = tpu.matmul %5, %7, %cst {dimension_numbers = #tpu.dot_dimension_numbers<[1], [0], [0], [1], [0, 0, 1, 1], [], []>} : vector<4x24xf32>, vector<24x21xf32>, vector<4x21xf32> -> vector<4x21xf32>
    %9 = arith.index_cast %4 : i32 to index
    %c0_7 = arith.constant 0 : index
    %c0_8 = arith.constant 0 : index
    %10 = vector.load %arg2[%9, %c0_7, %c0_8] : memref<6x4x21xf32, #tpu.memory_space<vmem>>, vector<1x4x21xf32>
    %11 = vector.shape_cast %10 : vector<1x4x21xf32> to vector<4x21xf32>
    %12 = arith.addf %8, %11 : vector<4x21xf32>
    %13 = arith.index_cast %4 : i32 to index
    %c0_9 = arith.constant 0 : index
    %c0_10 = arith.constant 0 : index
    %14 = vector.load %arg4[%13, %c0_9, %c0_10] : memref<6x4x21xf32, #tpu.memory_space<vmem>>, vector<1x4x21xf32>
    %15 = vector.shape_cast %14 : vector<1x4x21xf32> to vector<4x21xf32>
    %16 = vector.shape_cast %12 : vector<4x21xf32> to vector<1x4x21xf32>
    tpu.vector_store %arg4[%13, %c0_9, %c0_10], %16 {strides = array<i32>} : memref<6x4x21xf32, #tpu.memory_space<vmem>>, vector<1x4x21xf32>,
    %17 = vector.extract_strided_slice %12 {offsets = [0, 0], sizes = [4, 8], strides = [1, 1]} : vector<4x21xf32> to vector<4x8xf32>
    %c0_11 = arith.constant 0 : index
    %c0_12 = arith.constant 0 : index
    %18 = vector.load %arg5[%c0_11, %c0_12] : memref<4x24xf32, #tpu.memory_space<vmem>>, vector<4x8xf32>
    tpu.vector_store %arg5[%c0_11, %c0_12], %17 {strides = array<i32>} : memref<4x24xf32, #tpu.memory_space<vmem>>, vector<4x8xf32>,
    %c1_i32 = arith.constant 1 : i32
    %19 = arith.addi %3, %c1_i32 : i32
    %c0_13 = arith.constant 0 : index
    %c0_14 = arith.constant 0 : index
    %20 = vector.load %arg5[%c0_13, %c0_14] : memref<4x24xf32, #tpu.memory_space<vmem>>, vector<4x24xf32>
    %c1 = arith.constant 1 : index
    %c0_15 = arith.constant 0 : index
    %c0_16 = arith.constant 0 : index
    %21 = vector.load %arg3[%c1, %c0_15, %c0_16] : memref<3x24x21xf32, #tpu.memory_space<vmem>>, vector<1x24x21xf32>
    %22 = vector.shape_cast %21 : vector<1x24x21xf32> to vector<24x21xf32>
    %cst_17 = arith.constant dense<0.000000e+00> : vector<4x21xf32>
    %23 = tpu.matmul %20, %22, %cst_17 {dimension_numbers = #tpu.dot_dimension_numbers<[1], [0], [0], [1], [0, 0, 1, 1], [], []>} : vector<4x24xf32>, vector<24x21xf32>, vector<4x21xf32> -> vector<4x21xf32>
    %24 = arith.index_cast %19 : i32 to index
    %c0_18 = arith.constant 0 : index
    %c0_19 = arith.constant 0 : index
    %25 = vector.load %arg2[%24, %c0_18, %c0_19] : memref<6x4x21xf32, #tpu.memory_space<vmem>>, vector<1x4x21xf32>
    %26 = vector.shape_cast %25 : vector<1x4x21xf32> to vector<4x21xf32>
    %27 = arith.addf %23, %26 : vector<4x21xf32>
    %28 = arith.index_cast %19 : i32 to index
    %c0_20 = arith.constant 0 : index
    %c0_21 = arith.constant 0 : index
    %29 = vector.load %arg4[%28, %c0_20, %c0_21] : memref<6x4x21xf32, #tpu.memory_space<vmem>>, vector<1x4x21xf32>
    %30 = vector.shape_cast %29 : vector<1x4x21xf32> to vector<4x21xf32>
    %31 = vector.shape_cast %27 : vector<4x21xf32> to vector<1x4x21xf32>
    tpu.vector_store %arg4[%28, %c0_20, %c0_21], %31 {strides = array<i32>} : memref<6x4x21xf32, #tpu.memory_space<vmem>>, vector<1x4x21xf32>,
    %32 = vector.extract_strided_slice %27 {offsets = [0, 0], sizes = [4, 8], strides = [1, 1]} : vector<4x21xf32> to vector<4x8xf32>
    %c0_22 = arith.constant 0 : index
    %c8 = arith.constant 8 : index
    %33 = vector.load %arg5[%c0_22, %c8] : memref<4x24xf32, #tpu.memory_space<vmem>>, vector<4x8xf32>
    tpu.vector_store %arg5[%c0_22, %c8], %32 {strides = array<i32>} : memref<4x24xf32, #tpu.memory_space<vmem>>, vector<4x8xf32>,
    %c2_i32 = arith.constant 2 : i32
    %34 = arith.addi %3, %c2_i32 : i32
    %c0_23 = arith.constant 0 : index
    %c0_24 = arith.constant 0 : index
    %35 = vector.load %arg5[%c0_23, %c0_24] : memref<4x24xf32, #tpu.memory_space<vmem>>, vector<4x24xf32>
    %c2 = arith.constant 2 : index
    %c0_25 = arith.constant 0 : index
    %c0_26 = arith.constant 0 : index
    %36 = vector.load %arg3[%c2, %c0_25, %c0_26] : memref<3x24x21xf32, #tpu.memory_space<vmem>>, vector<1x24x21xf32>
    %37 = vector.shape_cast %36 : vector<1x24x21xf32> to vector<24x21xf32>
    %cst_27 = arith.constant dense<0.000000e+00> : vector<4x21xf32>
    %38 = tpu.matmul %35, %37, %cst_27 {dimension_numbers = #tpu.dot_dimension_numbers<[1], [0], [0], [1], [0, 0, 1, 1], [], []>} : vector<4x24xf32>, vector<24x21xf32>, vector<4x21xf32> -> vector<4x21xf32>
    %39 = arith.index_cast %34 : i32 to index
    %c0_28 = arith.constant 0 : index
    %c0_29 = arith.constant 0 : index
    %40 = vector.load %arg2[%39, %c0_28, %c0_29] : memref<6x4x21xf32, #tpu.memory_space<vmem>>, vector<1x4x21xf32>
    %41 = vector.shape_cast %40 : vector<1x4x21xf32> to vector<4x21xf32>
    %42 = arith.addf %38, %41 : vector<4x21xf32>
    %43 = arith.index_cast %34 : i32 to index
    %c0_30 = arith.constant 0 : index
    %c0_31 = arith.constant 0 : index
    %44 = vector.load %arg4[%43, %c0_30, %c0_31] : memref<6x4x21xf32, #tpu.memory_space<vmem>>, vector<1x4x21xf32>
    %45 = vector.shape_cast %44 : vector<1x4x21xf32> to vector<4x21xf32>
    %46 = vector.shape_cast %42 : vector<4x21xf32> to vector<1x4x21xf32>
    tpu.vector_store %arg4[%43, %c0_30, %c0_31], %46 {strides = array<i32>} : memref<6x4x21xf32, #tpu.memory_space<vmem>>, vector<1x4x21xf32>,
    %47 = vector.extract_strided_slice %42 {offsets = [0, 0], sizes = [4, 8], strides = [1, 1]} : vector<4x21xf32> to vector<4x8xf32>
    %c0_32 = arith.constant 0 : index
    %c16 = arith.constant 16 : index
    %48 = vector.load %arg5[%c0_32, %c16] : memref<4x24xf32, #tpu.memory_space<vmem>>, vector<4x8xf32>
    tpu.vector_store %arg5[%c0_32, %c16], %47 {strides = array<i32>} : memref<4x24xf32, #tpu.memory_space<vmem>>, vector<4x8xf32>,
    %c1_i32_33 = arith.constant 1 : i32
    %c3_i32_34 = arith.constant 3 : i32
    %49 = arith.muli %c1_i32_33, %c3_i32_34 : i32
    %c0_i32_35 = arith.constant 0 : i32
    %50 = arith.addi %49, %c0_i32_35 : i32
    %c0_36 = arith.constant 0 : index
    %c0_37 = arith.constant 0 : index
    %51 = vector.load %arg5[%c0_36, %c0_37] : memref<4x24xf32, #tpu.memory_space<vmem>>, vector<4x24xf32>
    %c0_38 = arith.constant 0 : index
    %c0_39 = arith.constant 0 : index
    %c0_40 = arith.constant 0 : index
    %52 = vector.load %arg3[%c0_38, %c0_39, %c0_40] : memref<3x24x21xf32, #tpu.memory_space<vmem>>, vector<1x24x21xf32>
    %53 = vector.shape_cast %52 : vector<1x24x21xf32> to vector<24x21xf32>
    %cst_41 = arith.constant dense<0.000000e+00> : vector<4x21xf32>
    %54 = tpu.matmul %51, %53, %cst_41 {dimension_numbers = #tpu.dot_dimension_numbers<[1], [0], [0], [1], [0, 0, 1, 1], [], []>} : vector<4x24xf32>, vector<24x21xf32>, vector<4x21xf32> -> vector<4x21xf32>
    %55 = arith.index_cast %50 : i32 to index
    %c0_42 = arith.constant 0 : index
    %c0_43 = arith.constant 0 : index
    %56 = vector.load %arg2[%55, %c0_42, %c0_43] : memref<6x4x21xf32, #tpu.memory_space<vmem>>, vector<1x4x21xf32>
    %57 = vector.shape_cast %56 : vector<1x4x21xf32> to vector<4x21xf32>
    %58 = arith.addf %54, %57 : vector<4x21xf32>
    %59 = arith.index_cast %50 : i32 to index
    %c0_44 = arith.constant 0 : index
    %c0_45 = arith.constant 0 : index
    %60 = vector.load %arg4[%59, %c0_44, %c0_45] : memref<6x4x21xf32, #tpu.memory_space<vmem>>, vector<1x4x21xf32>
    %61 = vector.shape_cast %60 : vector<1x4x21xf32> to vector<4x21xf32>
    %62 = vector.shape_cast %58 : vector<4x21xf32> to vector<1x4x21xf32>
    tpu.vector_store %arg4[%59, %c0_44, %c0_45], %62 {strides = array<i32>} : memref<6x4x21xf32, #tpu.memory_space<vmem>>, vector<1x4x21xf32>,
    %63 = vector.extract_strided_slice %58 {offsets = [0, 0], sizes = [4, 8], strides = [1, 1]} : vector<4x21xf32> to vector<4x8xf32>
    %c0_46 = arith.constant 0 : index
    %c0_47 = arith.constant 0 : index
    %64 = vector.load %arg5[%c0_46, %c0_47] : memref<4x24xf32, #tpu.memory_space<vmem>>, vector<4x8xf32>
    tpu.vector_store %arg5[%c0_46, %c0_47], %63 {strides = array<i32>} : memref<4x24xf32, #tpu.memory_space<vmem>>, vector<4x8xf32>,
    %c1_i32_48 = arith.constant 1 : i32
    %65 = arith.addi %49, %c1_i32_48 : i32
    %c0_49 = arith.constant 0 : index
    %c0_50 = arith.constant 0 : index
    %66 = vector.load %arg5[%c0_49, %c0_50] : memref<4x24xf32, #tpu.memory_space<vmem>>, vector<4x24xf32>
    %c1_51 = arith.constant 1 : index
    %c0_52 = arith.constant 0 : index
    %c0_53 = arith.constant 0 : index
    %67 = vector.load %arg3[%c1_51, %c0_52, %c0_53] : memref<3x24x21xf32, #tpu.memory_space<vmem>>, vector<1x24x21xf32>
    %68 = vector.shape_cast %67 : vector<1x24x21xf32> to vector<24x21xf32>
    %cst_54 = arith.constant dense<0.000000e+00> : vector<4x21xf32>
    %69 = tpu.matmul %66, %68, %cst_54 {dimension_numbers = #tpu.dot_dimension_numbers<[1], [0], [0], [1], [0, 0, 1, 1], [], []>} : vector<4x24xf32>, vector<24x21xf32>, vector<4x21xf32> -> vector<4x21xf32>
    %70 = arith.index_cast %65 : i32 to index
    %c0_55 = arith.constant 0 : index
    %c0_56 = arith.constant 0 : index
    %71 = vector.load %arg2[%70, %c0_55, %c0_56] : memref<6x4x21xf32, #tpu.memory_space<vmem>>, vector<1x4x21xf32>
    %72 = vector.shape_cast %71 : vector<1x4x21xf32> to vector<4x21xf32>
    %73 = arith.addf %69, %72 : vector<4x21xf32>
    %74 = arith.index_cast %65 : i32 to index
    %c0_57 = arith.constant 0 : index
    %c0_58 = arith.constant 0 : index
    %75 = vector.load %arg4[%74, %c0_57, %c0_58] : memref<6x4x21xf32, #tpu.memory_space<vmem>>, vector<1x4x21xf32>
    %76 = vector.shape_cast %75 : vector<1x4x21xf32> to vector<4x21xf32>
    %77 = vector.shape_cast %73 : vector<4x21xf32> to vector<1x4x21xf32>
    tpu.vector_store %arg4[%74, %c0_57, %c0_58], %77 {strides = array<i32>} : memref<6x4x21xf32, #tpu.memory_space<vmem>>, vector<1x4x21xf32>,
    %78 = vector.extract_strided_slice %73 {offsets = [0, 0], sizes = [4, 8], strides = [1, 1]} : vector<4x21xf32> to vector<4x8xf32>
    %c0_59 = arith.constant 0 : index
    %c8_60 = arith.constant 8 : index
    %79 = vector.load %arg5[%c0_59, %c8_60] : memref<4x24xf32, #tpu.memory_space<vmem>>, vector<4x8xf32>
    tpu.vector_store %arg5[%c0_59, %c8_60], %78 {strides = array<i32>} : memref<4x24xf32, #tpu.memory_space<vmem>>, vector<4x8xf32>,
    %c2_i32_61 = arith.constant 2 : i32
    %80 = arith.addi %49, %c2_i32_61 : i32
    %c0_62 = arith.constant 0 : index
    %c0_63 = arith.constant 0 : index
    %81 = vector.load %arg5[%c0_62, %c0_63] : memref<4x24xf32, #tpu.memory_space<vmem>>, vector<4x24xf32>
    %c2_64 = arith.constant 2 : index
    %c0_65 = arith.constant 0 : index
    %c0_66 = arith.constant 0 : index
    %82 = vector.load %arg3[%c2_64, %c0_65, %c0_66] : memref<3x24x21xf32, #tpu.memory_space<vmem>>, vector<1x24x21xf32>
    %83 = vector.shape_cast %82 : vector<1x24x21xf32> to vector<24x21xf32>
    %cst_67 = arith.constant dense<0.000000e+00> : vector<4x21xf32>
    %84 = tpu.matmul %81, %83, %cst_67 {dimension_numbers = #tpu.dot_dimension_numbers<[1], [0], [0], [1], [0, 0, 1, 1], [], []>} : vector<4x24xf32>, vector<24x21xf32>, vector<4x21xf32> -> vector<4x21xf32>
    %85 = arith.index_cast %80 : i32 to index
    %c0_68 = arith.constant 0 : index
    %c0_69 = arith.constant 0 : index
    %86 = vector.load %arg2[%85, %c0_68, %c0_69] : memref<6x4x21xf32, #tpu.memory_space<vmem>>, vector<1x4x21xf32>
    %87 = vector.shape_cast %86 : vector<1x4x21xf32> to vector<4x21xf32>
    %88 = arith.addf %84, %87 : vector<4x21xf32>
    %89 = arith.index_cast %80 : i32 to index
    %c0_70 = arith.constant 0 : index
    %c0_71 = arith.constant 0 : index
    %90 = vector.load %arg4[%89, %c0_70, %c0_71] : memref<6x4x21xf32, #tpu.memory_space<vmem>>, vector<1x4x21xf32>
    %91 = vector.shape_cast %90 : vector<1x4x21xf32> to vector<4x21xf32>
    %92 = vector.shape_cast %88 : vector<4x21xf32> to vector<1x4x21xf32>
    tpu.vector_store %arg4[%89, %c0_70, %c0_71], %92 {strides = array<i32>} : memref<6x4x21xf32, #tpu.memory_space<vmem>>, vector<1x4x21xf32>,
    %93 = vector.extract_strided_slice %88 {offsets = [0, 0], sizes = [4, 8], strides = [1, 1]} : vector<4x21xf32> to vector<4x8xf32>
    %c0_72 = arith.constant 0 : index
    %c16_73 = arith.constant 16 : index
    %94 = vector.load %arg5[%c0_72, %c16_73] : memref<4x24xf32, #tpu.memory_space<vmem>>, vector<4x8xf32>
    tpu.vector_store %arg5[%c0_72, %c16_73], %93 {strides = array<i32>} : memref<4x24xf32, #tpu.memory_space<vmem>>, vector<4x8xf32>,
    %c2_i32_74 = arith.constant 2 : i32
    return
  }
  func.func @transform_0(%arg0: i32) -> (i32, i32) {
    %c0_i32 = arith.constant 0 : i32
    %c0_i32_0 = arith.constant 0 : i32
    %c0_i32_1 = arith.constant 0 : i32
    return %c0_i32, %c0_i32_0 : i32, i32
  }
  func.func @transform_1(%arg0: i32) -> (i32, i32, i32) {
    %c0_i32 = arith.constant 0 : i32
    %c0_i32_0 = arith.constant 0 : i32
    %c0_i32_1 = arith.constant 0 : i32
    return %arg0, %c0_i32, %c0_i32_0 : i32, i32, i32
  }
  func.func @transform_2(%arg0: i32) -> (i32, i32, i32) {
    %c0_i32 = arith.constant 0 : i32
    %c0_i32_0 = arith.constant 0 : i32
    %c0_i32_1 = arith.constant 0 : i32
    %c0_i32_2 = arith.constant 0 : i32
    return %c0_i32, %c0_i32_0, %c0_i32_1 : i32, i32, i32
  }
  func.func @transform_3(%arg0: i32) -> (i32, i32, i32) {
    %c0_i32 = arith.constant 0 : i32
    %c0_i32_0 = arith.constant 0 : i32
    %c0_i32_1 = arith.constant 0 : i32
    return %arg0, %c0_i32, %c0_i32_0 : i32, i32, i32
  }
}

</mosaic_0001>

<bundles_post_ra>
// kernel: tpu_custom_call.1
= control target key start
LH: loop header
LB: loop body
LE: loop exit
PB: predicated region body
PF: predicated region fallthrough
CT: control target
= control target key end

     0   :  { %8 = vsyncpa [#allocation4], 0  ;;  %s1542_s0 = inlined_call_operand.hbm [shape: f32[4,24], index: 0, kind: input, shape index: {}]   ;;  %s1543_s1 = inlined_call_operand.hbm [shape: f32[12,4,21], index: 1, kind: input, shape index: {}]   ;;  %s1544_s2 = inlined_call_operand.hbm [shape: f32[3,24,21], index: 2, kind: input, shape index: {}]   ;;  %s1545_s3 = inlined_call_operand.hbm [shape: f32[12,4,21], index: 3, kind: output, shape index: {}]  }
   0x1   :  { %9 = vsyncpa [#allocation7], 0 }
   0x2   :  { %11 = vsyncpa [#allocation7 + $0x1], 0 }
   0x3   :  { %12 = vsyncpa [#allocation5], 0 }
   0x4   :  { %14 = vsyncpa [#allocation5 + $0x1], 0  ;;  %s1250_s12 = smov 0   ;;  %s1252_s13 = smov 0  }
   0x5   :  { %s1254_s14 = smov 0   ;;  %s1256_s15 = smov 0  }
   0x6 LB: > { %s1271_s16 = sadd.s32 4294967295, %s1213_s15   ;;  %s846_s17 = sadd.s32 4294967294, %s1213_s15   ;;  %s1213_s15 = sphi %s1256_s15, %s1574_s15   ;;  %s1209_s14 = sphi %s1254_s14, %s1573_s14   ;;  %s1205_s13 = sphi %s1252_s13, %s1572_s13   ;;  %s1201_s12 = sphi %s1250_s12, %s1571_s12  }
   0x7   : > { %s1275_s18 = sadd.s32 1, %s1213_s15   ;;  %s48_s19 = sadd.s32 1, %s1209_s14 }
   0x8   : > { %s45_s20 = ssub.s32 %s1213_s15, %s1275_s18  ;;  %p55_p0 = scmp.ne.s32.totalorder %s1209_s14, %s1205_s13 }
   0x9   : > { %p46_p1 = scmp.eq.s32.totalorder %s45_s20, 0  ;;  %p56_p2 = scmp.eq.s32.totalorder %s1213_s15, 0 }
   0xa   : > { %p61_p3 = scmp.ne.s32.totalorder %s1205_s13, %s1201_s12  ;;  %p1546_p4 = scmp.eq.s32.totalorder %s1271_s16, 0 }
   0xb   : > { %s1287_s21 = scalar_select %p46_p1, %s1209_s14, %s48_s19  }
   0xc   : > { %p1289_p5 = por %p56_p2, %p55_p0  ;;  %p1295_p6 = por %p1546_p4, %p61_p3 }
   0xd   : > { %p106_p7 = scmp.eq.s32.totalorder %s1271_s16, 1  ;;  %p112_p8 = scmp.eq.s32.totalorder %s846_s17, 1 }
   0xe   : > { %s1551_s22 = scalar_select %p1289_p5, 1, 0 }
   0xf   : > { %s1552_s23 = scalar_select %p1295_p6, 1, 0 }
  0x10   : > { %p847_p9 = scmp.ge.s32.totalorder %s1213_s15, 1  ;;  %p119_p10 = scmp.lt.s32.totalorder %s1213_s15, 3 }
  0x11   : > { %p1302_p11 = por %p106_p7, %p55_p0  ;;  %p1306_p12 = por %p112_p8, %p61_p3 }
  0x12   : > { %p1310_p13 = pnand %p847_p9, %p119_p10  ;;  %s1215_s27 = smov [#allocation8]  }
  0x13   : > { %s1553_s24 = scalar_select %p1302_p11, 1, 0 }
  0x14   : > { %s1554_s25 = scalar_select %p1306_p12, 1, 0 }
  0x15   : > { %s1555_s26 = scalar_select %p1310_p13, 1, 0 }
  0x16   : > { %p987_p2 = pneg %p1310_p13  ;;  %s142_s28 = sshll.u32 %s1215_s27, 4  ;;  %s143_s28 = int_to_ptr.vmem [resolvable:$true] %s142_s28 }
  0x17   : > { %s1216_s30 = smov [#allocation3]   ;;  %s1053_s7 = scalar_lea.hbm %s1544_s2, 1152 }
  0x18   : > { %p1319_p0 = pnand %p987_p2, %p1546_p4  ;;  %s132_s4 = sshll.u32 %s1216_s30, 4  ;;  %s133_s4 = int_to_ptr.vmem [resolvable:$true] %s132_s4 }
  0x19   : > { %p1054_p8 = scmp.ne.s32.totalorder %s1544_s2, %s1053_s7  ;;  %p1060_p3 = scmp.lt.u32.totalorder %s1053_s7, %s1544_s2 }
  0x1a   : > { %p1055_p9 = pneg %p1319_p0 }
  0x1c   : > { %p1056_p10 = pnand %p1055_p9, %p1054_p8 }
  0x1e   : > { %p1057_p2 = pneg %p1056_p10 }
  0x20   : > { %p1062_p1 = pnand %p1060_p3, %p1057_p2 }
  0x22   : > { %1065 = shalt.err (!%p1062_p1)
}
  0x23   : > { %s1066_s17 = scalar_lea.vmem %s143_s28, 1152  ;;  %p1074_p11 = scmp.lt.s32.totalorder %s143_s28, %s143_s28 }
  0x24   : > { %p1067_p4 = scmp.ne.s32.totalorder %s143_s28, %s1066_s17  ;;  %p1075_p6 = scmp.lt.s32.totalorder %s1066_s17, %s1066_s17 }
  0x26   : > { %p1069_p7 = pnand %p1067_p4, %p1055_p9  ;;  %p1076_p13 = por %p1075_p6, %p1074_p11 }
  0x28   : > { %p1070_p12 = pneg %p1069_p7 }
  0x2a   : > { %p1077_p5 = pnand %p1076_p13, %p1070_p12 }
  0x2c   : > { %1080 = shalt.err (!%p1077_p5)
}
  0x2d   : > { %s1217_s19 = smov 128   ;;  %s1218_s20 = smov 8  }
  0x2e   : > { %993 = dma.hbm_to_vmem [thread:$0]  (!%p1319_p0), %s1544_s2, 1152, %s143_s28, [#allocation7], %s1217_s19, %s1217_s19, %s1218_s20  }
  0x2f   : > { %p1557_p1 = scmp.ne.s32.totalorder %s1551_s22, 0  ;;  %p1558_p3 = scmp.lt.s32.totalorder %s1213_s15, 2 }
  0x30   : > { %s1081_s8 = scalar_lea.hbm %s1542_s0, 64 }
  0x31   : > { %p1351_p4 = pnand %p1558_p3, %p1557_p1  ;;  %p1082_p5 = scmp.ne.s32.totalorder %s1542_s0, %s1081_s8 }
  0x32   : > { %p1088_p12 = scmp.lt.u32.totalorder %s1081_s8, %s1542_s0 }
  0x33   : > { %s1559_s5 = scalar_select %p1351_p4, 1, 0 }
  0x34   : > { %p1084_p6 = pnand %p1082_p5, %p1055_p9 }
  0x36   : > { %p1085_p11 = pneg %p1084_p6 }
  0x38   : > { %p1090_p13 = pnand %p1088_p12, %p1085_p11 }
  0x3a   : > { %1093 = shalt.err (!%p1090_p13)
}
  0x3b   : > { %s1094_s11 = scalar_lea.vmem %s133_s4, 64  ;;  %p1102_p2 = scmp.lt.s32.totalorder %s133_s4, %s133_s4 }
  0x3c   : > { %p1095_p7 = scmp.ne.s32.totalorder %s133_s4, %s1094_s11  ;;  %p1103_p1 = scmp.lt.s32.totalorder %s1094_s11, %s1094_s11 }
  0x3e   : > { %p1097_p8 = pnand %p1095_p7, %p1055_p9  ;;  %p1104_p3 = por %p1103_p1, %p1102_p2 }
  0x40   : > { %p1098_p10 = pneg %p1097_p8 }
  0x42   : > { %p1105_p4 = pnand %p1104_p3, %p1098_p10 }
  0x44   : > { %1108 = shalt.err (!%p1105_p4)
}
  0x45   : > { %990 = dma.hbm_to_vmem [thread:$0]  (!%p1319_p0), %s1542_s0, 64, %s133_s4, [#allocation4]  }
  0x46   : > { %s156_s20 = sand.u32 1, %s1213_s15   ;;  %s158_s27 = sand.u32 1, %s1209_s14  }
  0x47   : > { %s973_s30 = smul.u32 24, %s158_s27  ;;  %s1385_s28 = scalar_lea.sflag [#allocation7], %s156_s20 }
  0x48   : > { %s875_s6 = smul.u32 384, %s1213_s15  ;;  %p1560_p9 = scmp.ne.s32.totalorder %s1559_s5, 0 }
  0x49   : > { %s160_s29 = scalar_lea.vmem [#allocation6], %s973_s30  ;;  %s1114_s17 = scalar_lea.hbm %s1543_s1, 768 }
  0x4a   : > { %s1381_s9 = scalar_lea.hbm %s1543_s1, %s875_s6  ;;  %s167_s10 = sshll.u32 %s160_s29, 4  ;;  %s1383_s10 = int_to_ptr.vmem [resolvable:$true] %s167_s10 }
  0x4b   : > { %s1109_s4 = scalar_lea.hbm %s1381_s9, 384  ;;  %p1111_p4 = pneg %p1560_p9 }
  0x4c   : > { %p1110_p0 = scmp.ne.s32.totalorder %s1381_s9, %s1109_s4  ;;  %p1115_p11 = scmp.lt.u32.totalorder %s1381_s9, %s1543_s1 }
  0x4d   : > { %p1116_p12 = scmp.lt.u32.totalorder %s1114_s17, %s1109_s4  ;;  %p1118_p7 = scmp.lt.u32.totalorder %s1109_s4, %s1381_s9 }
  0x4e   : > { %p1112_p5 = pnand %p1111_p4, %p1110_p0 }
  0x4f   : > { %p1117_p13 = por %p1116_p12, %p1115_p11 }
  0x50   : > { %p1113_p6 = pneg %p1112_p5 }
  0x51   : > { %p1119_p8 = por %p1118_p7, %p1117_p13 }
  0x53   : > { %p1120_p10 = pnand %p1119_p8, %p1113_p6 }
  0x55   : > { %1123 = shalt.err (!%p1120_p10)
}
  0x56   : > { %s1124_s20 = scalar_lea.vmem %s1383_s10, 384  ;;  %s1219_s30 = smov [#allocation6]  }
  0x57   : > { %p1125_p2 = scmp.ne.s32.totalorder %s1383_s10, %s1124_s20  ;;  %s1129_s6 = sshll.u32 %s1219_s30, 4  ;;  %s1130_s6 = int_to_ptr.vmem [resolvable:$false] %s1129_s6 }
  0x58   : > { %s1131_s7 = scalar_lea.vmem %s1130_s6, 768  ;;  %p1132_p0 = scmp.lt.s32.totalorder %s1383_s10, %s1130_s6 }
  0x59   : > { %p1127_p1 = pnand %p1125_p2, %p1111_p4  ;;  %p1133_p5 = scmp.lt.s32.totalorder %s1131_s7, %s1124_s20 }
  0x5b   : > { %p1128_p3 = pneg %p1127_p1  ;;  %p1134_p11 = por %p1133_p5, %p1132_p0 }
  0x5d   : > { %p1135_p12 = pnand %p1134_p11, %p1128_p3 }
  0x5f   : > { %1138 = shalt.err (!%p1135_p12)
}
  0x60   : > { %s1220_s8 = smov 64   ;;  %s1221_s29 = smov 4  }
  0x61   : > { %997 = dma.hbm_to_vmem [thread:$0]  (!%p1560_p9), %s1381_s9, 384, %s1383_s10, %s1385_s28, %s1220_s8, %s1220_s8, %s1221_s29  }
  0x62   : > { %p1561_p4 = scmp.ne.s32.totalorder %s1555_s26, 0 }
  0x63   : > { %p1562_p6 = scmp.eq.s32.totalorder (!%p1561_p4), %s1271_s16, 0 }
  0x64   : > { %179 = sbr.rel (%p1561_p4) target bundleno = 1920 (0x780), region = 32 }
  0x6b   : > { %1184 = dma.done.wait (%p1562_p6), [#allocation4], 64   ;;  %p1563_p13 = pmov %p1562_p6 }
  0x6c   : > { %s185_s4 = sand.u32 1, %s1271_s16   ;;  %s187_s22 = sand.u32 1, %s1205_s13  }
  0x6d   : > { %1186 = vsyncadd (%p1563_p13), [#allocation4], 4294967232  ;;  %s974_s11 = smul.u32 24, %s187_s22  ;;  %s186_s17 = scalar_lea.sflag [#allocation7], %s185_s4 }
  0x6e   : > { %p1564_p9 = scmp.ne.s32.totalorder %s1552_s23, 0 }
  0x6f   : > { %s1423_s5 = scalar_lea.vmem [#allocation6], %s974_s11 }
  0x70   : > { %1188 = dma.done.wait (%p1564_p9), %s186_s17, 384  }
  0x71   : > { %1190 = vsyncadd (%p1564_p9), %s186_s17, 4294966912  ;;  %p1565_p7 = pmov %p1562_p6 }
  0x72   : > { %p1566_p8 = pmov %p1562_p6 }
  0x73   : > { %1192 = dma.done.wait (%p1565_p7), [#allocation7], 1152  }
  0x74   : > { %1194 = vsyncadd (%p1566_p8), [#allocation7], 4294966144  ;;  %s1433_s26 = scalar_lea.vmem [#allocation9], %s974_s11  ;;  %p1567_p10 = scmp.ne.s32.totalorder %s1271_s16, 0 }
  0x75   : > { %v222_v0 = vld [vmem:[#allocation3] sm:$0xf] (!%p1567_p10)  ;;  %vm223_vm0 = vcmask (!%p1567_p10), 191488  }
  0x76   : > { %221 = sbr.rel (%p1567_p10) target bundleno = 125 (0x7d), region = 48  ;;  %224 = vst.msk [vmem:[#allocation2] sm:$0xf] (!%p1567_p10), %vm223_vm0, %v222_v0 }
  0x7d PF: > { %v226_v1 = vld [vmem:[#allocation8] sm:$0xff]  ;;  %v227_v2 = vld [vmem:[#allocation8 + $0x8] sm:$0xff]  ;;  %v1222_v3 = vmov 0.0|0.0   ;;  %vm1223_vm1 = vmmov 0   ;;  %v1224_v5 = vmov 0.0   ;;  %v228_v6 = vld [vmem:[#allocation8 + $0x10] sm:$0xff] }
  0x7e   : > { %955 = vmatprep.subr.bf16.mxu0 %v1222_v3  ;;  %v956_v4 = vpack.c.bf16 %v227_v2, %v226_v1  ;;  %907 = vmatprep.mubr.msk.f32.mxu0 %vm1223_vm1, %v1224_v5  ;;  %v225_v7 = vld [vmem:[#allocation2] sm:$0xf]  ;;  %vm230_vm2 = vcmask 195584   ;;  %v310_v8 = vld [vmem:[#allocation8 + $0x18] sm:$0xff]  ;;  %v311_v9 = vld [vmem:[#allocation8 + $0x20] sm:$0xff]  ;;  %vm304_vm3 = vcmask 166912  }
  0x7f   : > { %958 = vmatprep.subr.bf16.mxu1 %v1222_v3  ;;  %916 = vmatprep.mubr.msk.f32.mxu1 %vm1223_vm1, %v1224_v5  ;;  %v959_v10 = vpack.c.bf16 %v311_v9, %v310_v8  ;;  %v312_v11 = vld [vmem:[#allocation8 + $0x28] sm:$0xff]  ;;  %vm306_vm4 = vcmask 60416   ;;  %v398_v17 = vld [vmem:[#allocation8 + $0x30] sm:$0xff]  ;;  %v399_v18 = vld [vmem:[#allocation8 + $0x38] sm:$0xff]  ;;  %s1225_s23 = smov 8   ;;  %vm394_vm5 = vcmask 126016  }
  0x80   : > { %957 = vmatpush3.bf16.msra.mxu0 %v956_v4  ;;  %v229_v12 = vld [vmem:[%s1423_s5] sm:$0xf]  ;;  %v962_v19 = vpack.c.bf16 %v399_v18, %v398_v17  ;;  %v400_v20 = vld [vmem:[#allocation8 + $0x40] sm:$0xff]  ;;  %v857_v21 = vld [vmem:[%s1423_s5 + $0x4] sm:$0xf]  ;;  %s1226_s9 = smov 16  }
  0x81   : > { %905 = vmatprep.subr.mxu0 %v1224_v5  ;;  %960 = vmatpush3.bf16.msra.mxu1 %v959_v10  ;;  %v860_v27 = vld [vmem:[%s1423_s5 + $0x8] sm:$0xf]  ;;  %vm482_vm6 = vcmask 191616   ;;  %v863_v33 = vld [vmem:[%s1423_s5 + $0xc] sm:$0xf]  ;;  %s876_s10 = smul.u32 384, %s1271_s16 }
  0x82   : > { %914 = vmatprep.subr.mxu1 %v1224_v5  ;;  %v866_v38 = vld [vmem:[%s1423_s5 + $0x10] sm:$0xf]  ;;  %s752_s28 = sshll.u32 %s1433_s26, 4  ;;  %v869_v44 = vld [vmem:[%s1423_s5 + $0x14] sm:$0xf]  ;;  %s1499_s16 = scalar_lea.sflag [#allocation5], %s187_s22  ;;  %s1492_s28 = int_to_ptr.vmem [resolvable:$true] %s752_s28 }
  0x83   : > { %s1490_s20 = scalar_lea.hbm %s1545_s3, %s876_s10  ;;  %s1139_s30 = scalar_lea.vmem %s1492_s28, 384 }
  0x84   : > { %906 = vmatpush3.msra.mxu0 %v228_v6  ;;  %p1140_p2 = scmp.ne.s32.totalorder %s1492_s28, %s1139_s30  ;;  %p1568_p1 = scmp.ne.s32.totalorder %s1553_s24, 0 }
  0x85   : > { %908 = vmatmul.mubr.msk.f32.vlgmr.msra.gmra.mrb[0].mxu0 %vm230_vm2, %v225_v7  ;;  %961 = vmatprep.subr.bf16.mxu0 %v1222_v3  ;;  %s1227_s6 = smov [#allocation9]  }
  0x86   : > { %925 = vmatprep.mubr.msk.f32.mxu0 %vm1223_vm1, %v1224_v5  ;;  %915 = vmatpush3.msra.mxu1 %v312_v11  ;;  %p1141_p3 = pnand %p1140_p2, %p1568_p1  ;;  %s1143_s7 = sshll.u32 %s1227_s6, 4  ;;  %s1144_s7 = int_to_ptr.vmem [resolvable:$false] %s1143_s7 }
  0x87   : > { %964 = vmatprep.subr.bf16.mxu1 %v1222_v3  ;;  %963 = vmatpush3.bf16.msra.mxu0 %v962_v19  ;;  %s1145_s8 = scalar_lea.vmem %s1144_s7, 768  ;;  %p1146_p5 = scmp.lt.s32.totalorder %s1492_s28, %s1144_s7 }
  0x88   : > { %923 = vmatprep.subr.mxu0 %v1224_v5  ;;  %p1142_p0 = pneg %p1141_p3  ;;  %p1147_p11 = scmp.lt.s32.totalorder %s1145_s8, %s1139_s30 }
  0x8a   : > { %p1148_p12 = por %p1147_p11, %p1146_p5 }
  0x8b   : > { %924 = vmatpush3.msra.mxu0 %v400_v20 }
  0x8c   : > { %967 = vmatprep.subr.bf16.mxu0 %v1222_v3  ;;  %p1149_p4 = pnand %p1148_p12, %p1142_p0 }
 0x158   : > { %v300_v13 = vpop.f32.mrb[0].mxu0 }
 0x159   : > { %v301_v14 = vadd.f32 %v300_v13, %v229_v12  ;;  %v909_v15 = vpop.f32.mrb[1].mxu0 }
 0x15b   : > { %305 = vst.msk [vmem:[%s1433_s26] sm:$0xf] %vm304_vm3, %v301_v14 }
 0x15c   : > { %307 = vst.msk [vmem:[#allocation2] sm:$0xf] %vm306_vm4, %v301_v14 }
 0x163   : > { %v308_v16 = vld [vmem:[#allocation2] sm:$0xf] }
 0x164   : > { %917 = vmatmul.mubr.msk.f32.vlgmr.msra.gmra.mrb[0].mxu1 %vm230_vm2, %v308_v16 }
 0x165   : > { %966 = vmatpush3.bf16.msra.mxu1 %v956_v4  ;;  %934 = vmatprep.mubr.msk.f32.mxu1 %vm1223_vm1, %v1224_v5 }
 0x166   : > { %932 = vmatprep.subr.mxu1 %v1224_v5 }
 0x169   : > { %933 = vmatpush3.msra.mxu1 %v228_v6 }
 0x16a   : > { %970 = vmatprep.subr.bf16.mxu1 %v1222_v3 }
 0x237   : > { %v384_v22 = vpop.f32.mrb[0].mxu1 }
 0x238   : > { %v385_v23 = vadd.f32 %v857_v21, %v384_v22  ;;  %v918_v24 = vpop.f32.mrb[1].mxu1 }
 0x23a   : > { %859 = vst.msk [vmem:[%s1433_s26 + $0x4] sm:$0xf] %vm304_vm3, %v385_v23  ;;  %391 = vrot.lane.b32.xlu0 %v385_v23, %s1225_s23 }
 0x2ac   : > { %v392_v25 = vpop.permute.xlu0 %391 }
 0x2ad   : > { %395 = vst.msk [vmem:[#allocation2] sm:$0xf] %vm394_vm5, %v392_v25 }
 0x2b4   : > { %v396_v26 = vld [vmem:[#allocation2] sm:$0xf] }
 0x2b5   : > { %926 = vmatmul.mubr.msk.f32.vlgmr.msra.gmra.mrb[2].mxu0 %vm230_vm2, %v396_v26 }
 0x2b6   : > { %969 = vmatpush3.bf16.msra.mxu0 %v959_v10  ;;  %943 = vmatprep.mubr.msk.f32.mxu0 %vm1223_vm1, %v1224_v5 }
 0x2b7   : > { %941 = vmatprep.subr.mxu0 %v1224_v5 }
 0x2ba   : > { %942 = vmatpush3.msra.mxu0 %v312_v11 }
 0x388   : > { %v472_v28 = vpop.f32.mrb[2].mxu0 }
 0x389   : > { %v473_v29 = vadd.f32 %v860_v27, %v472_v28  ;;  %v927_v30 = vpop.f32.mrb[3].mxu0 }
 0x38b   : > { %862 = vst.msk [vmem:[%s1433_s26 + $0x8] sm:$0xf] %vm304_vm3, %v473_v29  ;;  %479 = vrot.lane.b32.xlu0 %v473_v29, %s1226_s9 }
 0x3fd   : > { %v480_v31 = vpop.permute.xlu0 %479 }
 0x3fe   : > { %483 = vst.msk [vmem:[#allocation2] sm:$0xf] %vm482_vm6, %v480_v31 }
 0x405   : > { %v484_v32 = vld [vmem:[#allocation2] sm:$0xf] }
 0x406   : > { %935 = vmatmul.mubr.msk.f32.vlgmr.msra.gmra.mrb[2].mxu1 %vm230_vm2, %v484_v32 }
 0x407   : > { %972 = vmatpush3.bf16.msra.mxu1 %v962_v19  ;;  %952 = vmatprep.mubr.msk.f32.mxu1 %vm1223_vm1, %v1224_v5 }
 0x408   : > { %950 = vmatprep.subr.mxu1 %v1224_v5 }
 0x40b   : > { %951 = vmatpush3.msra.mxu1 %v400_v20 }
 0x4d9   : > { %v559_v34 = vpop.f32.mrb[2].mxu1 }
 0x4da   : > { %v560_v35 = vadd.f32 %v863_v33, %v559_v34  ;;  %v936_v36 = vpop.f32.mrb[3].mxu1 }
 0x4dc   : > { %865 = vst.msk [vmem:[%s1433_s26 + $0xc] sm:$0xf] %vm304_vm3, %v560_v35 }
 0x4dd   : > { %565 = vst.msk [vmem:[#allocation2] sm:$0xf] %vm306_vm4, %v560_v35 }
 0x4e4   : > { %v566_v37 = vld [vmem:[#allocation2] sm:$0xf] }
 0x4e5   : > { %944 = vmatmul.mubr.msk.f32.vlgmr.msra.gmra.mrb[4].mxu0 %vm230_vm2, %v566_v37 }
 0x5b8   : > { %v641_v39 = vpop.f32.mrb[4].mxu0 }
 0x5b9   : > { %v642_v40 = vadd.f32 %v866_v38, %v641_v39  ;;  %v945_v41 = vpop.f32.mrb[5].mxu0 }
 0x5bb   : > { %868 = vst.msk [vmem:[%s1433_s26 + $0x10] sm:$0xf] %vm304_vm3, %v642_v40  ;;  %648 = vrot.lane.b32.xlu1 %v642_v40, %s1225_s23 }
 0x62d   : > { %v649_v42 = vpop.permute.xlu1 %648 }
 0x62e   : > { %651 = vst.msk [vmem:[#allocation2] sm:$0xf] %vm394_vm5, %v649_v42 }
 0x635   : > { %v652_v43 = vld [vmem:[#allocation2] sm:$0xf] }
 0x636   : > { %953 = vmatmul.mubr.msk.f32.vlgmr.msra.gmra.mrb[4].mxu1 %vm230_vm2, %v652_v43 }
 0x709   : > { %v727_v45 = vpop.f32.mrb[4].mxu1 }
 0x70a   : > { %v728_v46 = vadd.f32 %v869_v44, %v727_v45  ;;  %v954_v47 = vpop.f32.mrb[5].mxu1 }
 0x70c   : > { %871 = vst.msk [vmem:[%s1433_s26 + $0x14] sm:$0xf] %vm304_vm3, %v728_v46  ;;  %734 = vrot.lane.b32.xlu1 %v728_v46, %s1226_s9 }
 0x70d   : > { %1152 = shalt.err (!%p1149_p4)
}
 0x70e   : > { %s1153_s29 = scalar_lea.hbm %s1490_s20, 384  ;;  %s1157_s11 = scalar_lea.hbm %s1545_s3, 768 }
 0x70f   : > { %p1154_p6 = scmp.ne.s32.totalorder %s1490_s20, %s1153_s29  ;;  %p1158_p7 = scmp.lt.u32.totalorder %s1490_s20, %s1545_s3 }
 0x710   : > { %p1159_p8 = scmp.lt.u32.totalorder %s1157_s11, %s1153_s29  ;;  %p1161_p2 = scmp.lt.u32.totalorder %s1153_s29, %s1490_s20 }
 0x711   : > { %p1155_p13 = pnand %p1154_p6, %p1568_p1 }
 0x712   : > { %p1160_p10 = por %p1159_p8, %p1158_p7 }
 0x713   : > { %p1156_p9 = pneg %p1155_p13 }
 0x714   : > { %p1162_p3 = por %p1161_p2, %p1160_p10 }
 0x716   : > { %p1163_p0 = pnand %p1162_p3, %p1156_p9 }
 0x718   : > { %1166 = shalt.err (!%p1163_p0)
}
 0x719   : > { %s1228_s26 = smov 64   ;;  %s1229_s23 = smov 4  }
 0x71a   : > { %985 = dma.vmem_to_hbm [thread:$0]  (%p1568_p1), %s1492_s28, 384, %s1490_s20, %s1499_s16, %s1228_s26, %s1228_s26, %s1229_s23  }
 0x77e   : > { %v735_v48 = vpop.permute.xlu1 %734 }
 0x77f   : > { %737 = vst.msk [vmem:[#allocation2] sm:$0xf] %vm482_vm6, %v735_v48 }
 0x780 PF: > { %s767_s9 = sand.u32 1, %s1201_s12   ;;  %p1569_p5 = scmp.ne.s32.totalorder %s1554_s25, 0 }
 0x781   : > { %p1570_p11 = scmp.ge.s32.totalorder %s1213_s15, 2  ;;  %s768_s10 = scalar_lea.sflag [#allocation5], %s767_s9 }
 0x783   : > { %p999_p12 = pnand %p1570_p11, %p1569_p5 }
 0x785   : > { %1196 = dma.done.wait (!%p999_p12), %s768_s10, 384  }
 0x786   : > { %1198 = vsyncadd (!%p999_p12), %s768_s10, 4294966912  ;;  %p17_p1 = scmp.ge.s32.totalorder %s1275_s18, 4   ;;  %s1571_s12 = smov %s1205_s13 }
 0x787   : > { %s1572_s13 = smov %s1209_s14  ;;  %s1573_s14 = smov %s1287_s21 }
 0x788   : > { %s1574_s15 = smov %s1275_s18  ;;  %19 = sbr.rel (!%p17_p1) target bundleno = 6 (0x6), region = 102 }
 0x78f   :  { %773 = vsyncpa [#allocation4], 1 }
 0x790   :  { %775 = vsyncpa [#allocation4 + $0x1], 1 }
 0x791   :  { %776 = vsyncpa [#allocation7], 1 }
 0x792   :  { %778 = vsyncpa [#allocation7 + $0x1], 1 }
 0x793   :  { %779 = vsyncpa [#allocation5], 1 }
 0x794   :  { %781 = vsyncpa [#allocation5 + $0x1], 1 }

</bundles_post_ra>
